<compile_context>
chip_gen: v7x
topology: tpu7x:2x2x1
jax: 0.10.0
libtpu: 0.0.40
codegen_flags: <defaults>
</compile_context>

<pallas_src>
import math

import jax
import jax.numpy as jnp
from jax import lax
from jax.experimental import pallas as pl
from jax.experimental.pallas import tpu as pltpu


def _round_up(x, m):
    return ((x + m - 1) // m) * m


def _make_chain_kernel(num_layers):
    """Fused kernel: h = x; for l in layers: h = GELU(h @ W[l] + b[l]); out = h."""

    def kernel(x_ref, w_ref, b_ref, o_ref):
        inv_sqrt2 = jnp.float32(1.0 / math.sqrt(2.0))
        h = x_ref[...]                      # (tile_n, Fpad) f32
        # num_layers is a small Python int -> static unroll; weights stay
        # resident in VMEM, activation stays in vregs/VMEM between layers.
        for l in range(num_layers):
            y = jnp.dot(h, w_ref[l], preferred_element_type=jnp.float32)
            y = y + b_ref[l]                # (1, Fpad) broadcasts
            h = 0.5 * y * (1.0 + lax.erf(y * inv_sqrt2))   # exact GELU
        o_ref[...] = h.astype(o_ref.dtype)

    return kernel


def init_params(in_channels, key):
    """Deterministic PyTorch-Linear-style init (uniform +/- 1/sqrt(fin))."""
    params = []
    for fin, fout in zip(in_channels[:-1], in_channels[1:]):
        key, kw, kb = jax.random.split(key, 3)
        bound = 1.0 / math.sqrt(fin)
        # torch stores weight as (fout, fin); keep it pre-transposed (fin, fout).
        w_t = jax.random.uniform(kw, (fin, fout), jnp.float32, -bound, bound)
        b = jax.random.uniform(kb, (fout,), jnp.float32, -bound, bound)
        params.append((w_t, b))
    return params


def in_linear_layers_forward(x, params, *, tile_n=512):
    """Equivalent of inLinearLayers.forward: fused chain of Linear->GELU."""
    n, fin0 = x.shape
    num_layers = len(params)
    dims = [fin0] + [w_t.shape[1] for (w_t, _) in params]
    fout_last = dims[-1]

    # Lane-dense feature width: pad everything to a multiple of 128.
    fpad = _round_up(max(dims), 128)

    # Pack zero-padded weights / biases into resident stacks.
    w_stack = jnp.zeros((num_layers, fpad, fpad), jnp.float32)
    b_stack = jnp.zeros((num_layers, 1, fpad), jnp.float32)
    for l, (w_t, b) in enumerate(params):
        fi, fo = w_t.shape
        w_stack = w_stack.at[l, :fi, :fo].set(w_t.astype(jnp.float32))
        b_stack = b_stack.at[l, 0, :fo].set(b.astype(jnp.float32))

    # Tile the batch axis; tiles must be sublane-aligned (multiple of 8).
    tn = min(tile_n, _round_up(n, 8))
    n_pad = _round_up(n, tn)
    x_pad = jnp.zeros((n_pad, fpad), jnp.float32)
    x_pad = x_pad.at[:n, :fin0].set(x.astype(jnp.float32))

    grid = (n_pad // tn,)
    kernel = _make_chain_kernel(num_layers)

    # VMEM budget: 2x double-buffered (x tile + out tile) + resident W/b,
    # with headroom; sized conservatively so it also fits v7x's 64 MiB/TC.
    vmem_bytes = 4 * (2 * 2 * tn * fpad
                      + num_layers * fpad * fpad
                      + 2 * num_layers * fpad) + (2 << 20)
    vmem_bytes = int(min(max(vmem_bytes, 16 << 20), 48 << 20))

    out = pl.pallas_call(
        kernel,
        out_shape=jax.ShapeDtypeStruct((n_pad, fpad), jnp.float32),
        grid_spec=pltpu.PrefetchScalarGridSpec(
            num_scalar_prefetch=0,
            grid=grid,
            in_specs=[
                pl.BlockSpec((tn, fpad), lambda i: (i, 0)),                 # x tile
                pl.BlockSpec((num_layers, fpad, fpad), lambda i: (0, 0, 0)),  # W resident
                pl.BlockSpec((num_layers, 1, fpad), lambda i: (0, 0, 0)),     # b resident
            ],
            out_specs=pl.BlockSpec((tn, fpad), lambda i: (i, 0)),
        ),
        compiler_params=pltpu.CompilerParams(
            dimension_semantics=("parallel",),   # shard N across TCs on v7x
            vmem_limit_bytes=vmem_bytes,
        ),
    )(x_pad, w_stack, b_stack)

    # Slice away the N / feature padding.
    return out[:n, :fout_last]


if __name__ == "__main__":
    key = jax.random.PRNGKey(0)
    in_channels = (32, 64, 32)     # two Linear+GELU blocks
    batch = 8

    key, kx = jax.random.split(key)
    x = jax.random.normal(kx, (batch, in_channels[0]), jnp.float32)

    params = init_params(in_channels, key)

    out = in_linear_layers_forward(x, params)
    out = jax.block_until_ready(out)

    # Sanity check against a pure-JAX reference (exact erf GELU, like torch).
    ref = x
    for w_t, b in params:
        ref = jax.nn.gelu(ref @ w_t + b, approximate=False)
    assert out.shape == (batch, in_channels[-1])
    assert jnp.allclose(out, ref, atol=1e-5, rtol=1e-5)

    # TODO(synk): nn.Dropout(0.5) exists on the module but is never called in
    # forward(), so it is intentionally omitted (inference-path semantics).
    print("KERNEL_OK")
</pallas_src>

<mosaic_0001>
module attributes {stable_mosaic.version = 11 : i64} {
  func.func @kernel(%arg0: i32, %arg1: memref<8x128xf32, #tpu.memory_space<vmem>>, %arg2: memref<2x128x128xf32, #tpu.memory_space<vmem>>, %arg3: memref<2x1x128xf32, #tpu.memory_space<vmem>>, %arg4: memref<8x128xf32, #tpu.memory_space<vmem>>) attributes {dimension_semantics = [#tpu.dimension_semantics<parallel>], iteration_bounds = array<i64: 1>, scalar_prefetch = 0 : i64, scratch_operands = 0 : i64, tpu.core_type = #tpu.core_type<tc>, window_params = [{transform_indices = @transform_0, window_bounds = array<i64: 8, 128>}, {pipeline_mode = #tpu.pipeline_mode<synchronous>, transform_indices = @transform_1, window_bounds = array<i64: 2, 128, 128>}, {pipeline_mode = #tpu.pipeline_mode<synchronous>, transform_indices = @transform_2, window_bounds = array<i64: 2, 1, 128>}, {transform_indices = @transform_3, window_bounds = array<i64: 8, 128>}]} {
    %c0 = arith.constant 0 : index
    %c0_0 = arith.constant 0 : index
    %0 = vector.load %arg1[%c0, %c0_0] : memref<8x128xf32, #tpu.memory_space<vmem>>, vector<8x128xf32>
    %c0_1 = arith.constant 0 : index
    %c0_2 = arith.constant 0 : index
    %c0_3 = arith.constant 0 : index
    %1 = vector.load %arg2[%c0_1, %c0_2, %c0_3] : memref<2x128x128xf32, #tpu.memory_space<vmem>>, vector<1x128x128xf32>
    %2 = vector.shape_cast %1 : vector<1x128x128xf32> to vector<128x128xf32>
    %cst = arith.constant dense<0.000000e+00> : vector<8x128xf32>
    %3 = tpu.matmul %0, %2, %cst {dimension_numbers = #tpu.dot_dimension_numbers<[1], [0], [0], [1], [0, 0, 1, 1], [], []>} : vector<8x128xf32>, vector<128x128xf32>, vector<8x128xf32> -> vector<8x128xf32>
    %c0_4 = arith.constant 0 : index
    %c0_5 = arith.constant 0 : index
    %c0_6 = arith.constant 0 : index
    %4 = vector.load %arg3[%c0_4, %c0_5, %c0_6] : memref<2x1x128xf32, #tpu.memory_space<vmem>>, vector<1x1x128xf32>
    %5 = vector.shape_cast %4 : vector<1x1x128xf32> to vector<1x128xf32>
    %6 = vector.broadcast %5 : vector<1x128xf32> to vector<8x128xf32>
    %7 = arith.addf %3, %6 : vector<8x128xf32>
    %cst_7 = arith.constant 5.000000e-01 : f32
    %8 = vector.broadcast %cst_7 : f32 to vector<8x128xf32>
    %9 = arith.mulf %8, %7 : vector<8x128xf32>
    %cst_8 = arith.constant 0.707106769 : f32
    %10 = vector.broadcast %cst_8 : f32 to vector<8x128xf32>
    %11 = arith.mulf %7, %10 : vector<8x128xf32>
    %12 = math.erf %11 : vector<8x128xf32>
    %cst_9 = arith.constant 1.000000e+00 : f32
    %13 = vector.broadcast %cst_9 : f32 to vector<8x128xf32>
    %14 = arith.addf %13, %12 : vector<8x128xf32>
    %15 = arith.mulf %9, %14 : vector<8x128xf32>
    %c1 = arith.constant 1 : index
    %c0_10 = arith.constant 0 : index
    %c0_11 = arith.constant 0 : index
    %16 = vector.load %arg2[%c1, %c0_10, %c0_11] : memref<2x128x128xf32, #tpu.memory_space<vmem>>, vector<1x128x128xf32>
    %17 = vector.shape_cast %16 : vector<1x128x128xf32> to vector<128x128xf32>
    %cst_12 = arith.constant dense<0.000000e+00> : vector<8x128xf32>
    %18 = tpu.matmul %15, %17, %cst_12 {dimension_numbers = #tpu.dot_dimension_numbers<[1], [0], [0], [1], [0, 0, 1, 1], [], []>} : vector<8x128xf32>, vector<128x128xf32>, vector<8x128xf32> -> vector<8x128xf32>
    %c1_13 = arith.constant 1 : index
    %c0_14 = arith.constant 0 : index
    %c0_15 = arith.constant 0 : index
    %19 = vector.load %arg3[%c1_13, %c0_14, %c0_15] : memref<2x1x128xf32, #tpu.memory_space<vmem>>, vector<1x1x128xf32>
    %20 = vector.shape_cast %19 : vector<1x1x128xf32> to vector<1x128xf32>
    %21 = vector.broadcast %20 : vector<1x128xf32> to vector<8x128xf32>
    %22 = arith.addf %18, %21 : vector<8x128xf32>
    %cst_16 = arith.constant 5.000000e-01 : f32
    %23 = vector.broadcast %cst_16 : f32 to vector<8x128xf32>
    %24 = arith.mulf %23, %22 : vector<8x128xf32>
    %cst_17 = arith.constant 0.707106769 : f32
    %25 = vector.broadcast %cst_17 : f32 to vector<8x128xf32>
    %26 = arith.mulf %22, %25 : vector<8x128xf32>
    %27 = math.erf %26 : vector<8x128xf32>
    %cst_18 = arith.constant 1.000000e+00 : f32
    %28 = vector.broadcast %cst_18 : f32 to vector<8x128xf32>
    %29 = arith.addf %28, %27 : vector<8x128xf32>
    %30 = arith.mulf %24, %29 : vector<8x128xf32>
    %c0_19 = arith.constant 0 : index
    %c0_20 = arith.constant 0 : index
    %31 = vector.load %arg4[%c0_19, %c0_20] : memref<8x128xf32, #tpu.memory_space<vmem>>, vector<8x128xf32>
    tpu.vector_store %arg4[%c0_19, %c0_20], %30 {strides = array<i32>} : memref<8x128xf32, #tpu.memory_space<vmem>>, vector<8x128xf32>,
    return
  }
  func.func @transform_0(%arg0: i32) -> (i32, i32) {
    %c0_i32 = arith.constant 0 : i32
    %c0_i32_0 = arith.constant 0 : i32
    return %arg0, %c0_i32 : i32, i32
  }
  func.func @transform_1(%arg0: i32) -> (i32, i32, i32) {
    %c0_i32 = arith.constant 0 : i32
    %c0_i32_0 = arith.constant 0 : i32
    %c0_i32_1 = arith.constant 0 : i32
    %c0_i32_2 = arith.constant 0 : i32
    return %c0_i32, %c0_i32_0, %c0_i32_1 : i32, i32, i32
  }
  func.func @transform_2(%arg0: i32) -> (i32, i32, i32) {
    %c0_i32 = arith.constant 0 : i32
    %c0_i32_0 = arith.constant 0 : i32
    %c0_i32_1 = arith.constant 0 : i32
    %c0_i32_2 = arith.constant 0 : i32
    return %c0_i32, %c0_i32_0, %c0_i32_1 : i32, i32, i32
  }
  func.func @transform_3(%arg0: i32) -> (i32, i32) {
    %c0_i32 = arith.constant 0 : i32
    %c0_i32_0 = arith.constant 0 : i32
    return %arg0, %c0_i32 : i32, i32
  }
}

</mosaic_0001>

<bundles_post_ra>
// kernel: tpu_custom_call.1
= control target key start
LH: loop header
LB: loop body
LE: loop exit
PB: predicated region body
PF: predicated region fallthrough
CT: control target
= control target key end

     0   :  { %8 = vsyncpa [#allocation3], 0  ;;  %s589_s0 = inlined_call_operand.hbm [shape: f32[8,128], index: 0, kind: input, shape index: {}]   ;;  %s590_s1 = inlined_call_operand.hbm [shape: f32[2,128,128], index: 1, kind: input, shape index: {}]   ;;  %s591_s2 = inlined_call_operand.vmem [shape: f32[2,1,128], index: 2, kind: input, shape index: {}]   ;;  %s592_s3 = inlined_call_operand.hbm [shape: f32[8,128], index: 3, kind: output, shape index: {}]  }
   0x1   :  { %9 = vsyncpa [#allocation6], 0 }
   0x2   :  { %10 = vsyncpa [#allocation4], 0  ;;  %s496_s12 = smov [#allocation2]   ;;  %s497_s14 = smov [#allocation5]  }
   0x3   :  { %s17_s13 = sshll.u32 %s496_s12, 4  ;;  %s26_s15 = sshll.u32 %s497_s14, 4  ;;  %s18_s13 = int_to_ptr.vmem [resolvable:$true] %s17_s13  ;;  %s524_s15 = int_to_ptr.vmem [resolvable:$true] %s26_s15 }
   0x4   :  { %s424_s18 = scalar_lea.hbm %s589_s0, 128 }
   0x5   :  { %p425_p0 = scmp.ne.s32.totalorder %s589_s0, %s424_s18  ;;  %p428_p1 = scmp.lt.u32.totalorder %s424_s18, %s589_s0 }
   0x7   :  { %p430_p2 = pnand %p428_p1, %p425_p0 }
   0x9   :  { %433 = shalt.err (!%p430_p2)
}
   0xa   :  { %s434_s23 = scalar_lea.vmem %s18_s13, 128  ;;  %p439_p4 = scmp.lt.s32.totalorder %s18_s13, %s18_s13 }
   0xb   :  { %p435_p3 = scmp.ne.s32.totalorder %s18_s13, %s434_s23  ;;  %p440_p5 = scmp.lt.s32.totalorder %s434_s23, %s434_s23 }
   0xd   :  { %p441_p6 = por %p440_p5, %p439_p4 }
   0xf   :  { %p442_p7 = pnand %p441_p6, %p435_p3 }
  0x11   :  { %445 = shalt.err (!%p442_p7)
}
  0x12   :  { %20 = dma.hbm_to_vmem [thread:$0]  %s589_s0, 128, %s18_s13, [#allocation3]  }
  0x13   :  { %s446_s28 = scalar_lea.hbm %s590_s1, 4096 }
  0x14   :  { %p447_p8 = scmp.ne.s32.totalorder %s590_s1, %s446_s28  ;;  %p450_p9 = scmp.lt.u32.totalorder %s446_s28, %s590_s1 }
  0x16   :  { %p452_p10 = pnand %p450_p9, %p447_p8 }
  0x18   :  { %455 = shalt.err (!%p452_p10)
}
  0x19   :  { %s456_s6 = scalar_lea.vmem %s524_s15, 4096  ;;  %p461_p12 = scmp.lt.s32.totalorder %s524_s15, %s524_s15 }
  0x1a   :  { %p457_p11 = scmp.ne.s32.totalorder %s524_s15, %s456_s6  ;;  %p462_p13 = scmp.lt.s32.totalorder %s456_s6, %s456_s6 }
  0x1c   :  { %p463_p0 = por %p462_p13, %p461_p12 }
  0x1e   :  { %p464_p1 = pnand %p463_p0, %p457_p11 }
  0x20   :  { %467 = shalt.err (!%p464_p1)
}
  0x21   :  { %s498_s0 = smov 128   ;;  %s499_s7 = smov 8  }
  0x22   :  { %32 = dma.hbm_to_vmem [thread:$0]  %s590_s1, 4096, %s524_s15, [#allocation6], %s498_s0, %s498_s0, %s499_s7  }
  0x23   :  { %490 = dma.done.wait [#allocation3], 128  }
  0x24   :  { %491 = vsyncadd [#allocation3], 4294967168 }
  0x25   :  { %492 = dma.done.wait [#allocation6], 4096  }
  0x26   :  { %493 = vsyncadd [#allocation6], 4294963200  ;;  %v500_v0 = vmov 0.0|0.0   ;;  %vm501_vm0 = vmmov 0   ;;  %v502_v1 = vmov 0.0   ;;  %v42_v2 = vld [vmem:[#allocation5] sm:$0xff] }
  0x27   :  { %364 = vmatprep.subr.bf16.mxu0 %v500_v0  ;;  %326 = vmatprep.mubr.msk.f32.mxu0 %vm501_vm0, %v502_v1  ;;  %v43_v3 = vld [vmem:[#allocation5 + $0x8] sm:$0xff]  ;;  %v44_v4 = vld [vmem:[#allocation5 + $0x10] sm:$0xff]  ;;  %v45_v6 = vld [vmem:[#allocation5 + $0x18] sm:$0xff]  ;;  %s503_s13 = smov [#allocation7]  }
  0x28   :  { %388 = vmatprep.subr.bf16.mxu1 %v500_v0  ;;  %361 = vmatprep.mubr.msk.f32.mxu1 %vm501_vm0, %v502_v1  ;;  %v365_v5 = vpack.c.bf16 %v43_v3, %v42_v2  ;;  %v368_v7 = vpack.c.bf16 %v45_v6, %v44_v4  ;;  %v46_v8 = vld [vmem:[#allocation5 + $0x20] sm:$0xff]  ;;  %v47_v9 = vld [vmem:[#allocation5 + $0x28] sm:$0xff]  ;;  %v143_v12 = vld [vmem:[#allocation5 + $0x90] sm:$0xff]  ;;  %s247_s14 = sshll.u32 %s503_s13, 4  ;;  %s248_s14 = int_to_ptr.vmem [resolvable:$true] %s247_s14 }
  0x29   :  { %v141_v10 = vld [vmem:[#allocation5 + $0x80] sm:$0xff]  ;;  %v142_v11 = vld [vmem:[#allocation5 + $0x88] sm:$0xff]  ;;  %v144_v13 = vld [vmem:[#allocation5 + $0x98] sm:$0xff]  ;;  %v371_v14 = vpack.c.bf16 %v47_v9, %v46_v8  ;;  %s468_s15 = scalar_lea.vmem %s248_s14, 128  ;;  %p473_p3 = scmp.lt.s32.totalorder %s248_s14, %s248_s14 }
  0x2a   :  { %366 = vmatpush3.bf16.msra.mxu0 %v365_v5  ;;  %v389_v15 = vpack.c.bf16 %v142_v11, %v141_v10  ;;  %v48_v16 = vld [vmem:[#allocation5 + $0x30] sm:$0xff]  ;;  %v49_v17 = vld [vmem:[#allocation5 + $0x38] sm:$0xff]  ;;  %v392_v18 = vpack.c.bf16 %v144_v13, %v143_v12  ;;  %v145_v19 = vld [vmem:[#allocation5 + $0xa0] sm:$0xff]  ;;  %p469_p2 = scmp.ne.s32.totalorder %s248_s14, %s468_s15  ;;  %p474_p4 = scmp.lt.s32.totalorder %s468_s15, %s468_s15 }
  0x2b   :  { %367 = vmatprep.subr.bf16.mxu0 %v500_v0  ;;  %v146_v20 = vld [vmem:[#allocation5 + $0xa8] sm:$0xff]  ;;  %v374_v21 = vpack.c.bf16 %v49_v17, %v48_v16  ;;  %v50_v22 = vld [vmem:[#allocation5 + $0x40] sm:$0xff]  ;;  %v52_v26 = vld [vmem:[#allocation5 + $0x50] sm:$0xff] }
  0x2c   :  { %390 = vmatpush3.bf16.msra.mxu1 %v389_v15  ;;  %v51_v23 = vld [vmem:[#allocation5 + $0x48] sm:$0xff]  ;;  %v395_v24 = vpack.c.bf16 %v146_v20, %v145_v19  ;;  %v53_v27 = vld [vmem:[#allocation5 + $0x58] sm:$0xff]  ;;  %v54_v29 = vld [vmem:[#allocation5 + $0x60] sm:$0xff]  ;;  %p475_p5 = por %p474_p4, %p473_p3 }
  0x2d   :  { %391 = vmatprep.subr.bf16.mxu1 %v500_v0  ;;  %v377_v25 = vpack.c.bf16 %v51_v23, %v50_v22  ;;  %v380_v28 = vpack.c.bf16 %v53_v27, %v52_v26  ;;  %v55_v30 = vld [vmem:[#allocation5 + $0x68] sm:$0xff]  ;;  %v56_v32 = vld [vmem:[#allocation5 + $0x70] sm:$0xff]  ;;  %v57_v33 = vld [vmem:[#allocation5 + $0x78] sm:$0xff] }
  0x2e   :  { %369 = vmatpush3.bf16.msra.mxu0 %v368_v7  ;;  %v383_v31 = vpack.c.bf16 %v55_v30, %v54_v29  ;;  %v386_v34 = vpack.c.bf16 %v57_v33, %v56_v32  ;;  %v41_v35 = vld [vmem:[#allocation2] sm:$0xff]  ;;  %v147_v36 = vld [vmem:[#allocation5 + $0xb0] sm:$0xff]  ;;  %v149_v39 = vld [vmem:[#allocation5 + $0xc0] sm:$0xff]  ;;  %p476_p6 = pnand %p475_p5, %p469_p2 }
  0x2f   :  { %370 = vmatprep.subr.bf16.mxu0 %v500_v0  ;;  %v148_v37 = vld [vmem:[#allocation5 + $0xb8] sm:$0xff]  ;;  %v150_v40 = vld [vmem:[#allocation5 + $0xc8] sm:$0xff]  ;;  %v151_v42 = vld [vmem:[#allocation5 + $0xd0] sm:$0xff] }
  0x30   :  { %393 = vmatpush3.bf16.msra.mxu1 %v392_v18  ;;  %v398_v38 = vpack.c.bf16 %v148_v37, %v147_v36  ;;  %v401_v41 = vpack.c.bf16 %v150_v40, %v149_v39  ;;  %v152_v43 = vld [vmem:[#allocation5 + $0xd8] sm:$0xff]  ;;  %v153_v45 = vld [vmem:[#allocation5 + $0xe0] sm:$0xff]  ;;  %v154_v46 = vld [vmem:[#allocation5 + $0xe8] sm:$0xff] }
  0x31   :  { %394 = vmatprep.subr.bf16.mxu1 %v500_v0  ;;  %v404_v44 = vpack.c.bf16 %v152_v43, %v151_v42  ;;  %v407_v47 = vpack.c.bf16 %v154_v46, %v153_v45  ;;  %v155_v48 = vld [vmem:[#allocation5 + $0xf0] sm:$0xff]  ;;  %v156_v49 = vld [vmem:[#allocation5 + $0xf8] sm:$0xff] }
  0x32   :  { %372 = vmatpush3.bf16.msra.mxu0 %v371_v14  ;;  %v410_v50 = vpack.c.bf16 %v156_v49, %v155_v48  ;;  %v257_v51 = vld [vmem:[%s591_s2] ss:$0 sm:$0xff]  ;;  %v259_v60 = vld [vmem:[%s591_s2 + $0x1] ss:$0 sm:$0xff] }
  0x33   :  { %373 = vmatprep.subr.bf16.mxu0 %v500_v0 }
  0x34   :  { %396 = vmatpush3.bf16.msra.mxu1 %v395_v24 }
  0x35   :  { %397 = vmatprep.subr.bf16.mxu1 %v500_v0 }
  0x36   :  { %375 = vmatpush3.bf16.msra.mxu0 %v374_v21 }
  0x37   :  { %376 = vmatprep.subr.bf16.mxu0 %v500_v0 }
  0x38   :  { %399 = vmatpush3.bf16.msra.mxu1 %v398_v38 }
  0x39   :  { %400 = vmatprep.subr.bf16.mxu1 %v500_v0 }
  0x3a   :  { %378 = vmatpush3.bf16.msra.mxu0 %v377_v25 }
  0x3b   :  { %379 = vmatprep.subr.bf16.mxu0 %v500_v0 }
  0x3c   :  { %402 = vmatpush3.bf16.msra.mxu1 %v401_v41 }
  0x3d   :  { %403 = vmatprep.subr.bf16.mxu1 %v500_v0 }
  0x3e   :  { %381 = vmatpush3.bf16.msra.mxu0 %v380_v28 }
  0x3f   :  { %382 = vmatprep.subr.bf16.mxu0 %v500_v0 }
  0x40   :  { %405 = vmatpush3.bf16.msra.mxu1 %v404_v44 }
  0x41   :  { %406 = vmatprep.subr.bf16.mxu1 %v500_v0 }
  0x42   :  { %384 = vmatpush3.bf16.msra.mxu0 %v383_v31 }
  0x43   :  { %385 = vmatprep.subr.bf16.mxu0 %v500_v0 }
  0x44   :  { %408 = vmatpush3.bf16.msra.mxu1 %v407_v47 }
  0x45   :  { %409 = vmatprep.subr.bf16.mxu1 %v500_v0 }
  0x46   :  { %387 = vmatpush3.bf16.msra.mxu0 %v386_v34 }
  0x48   :  { %411 = vmatpush3.bf16.msra.mxu1 %v410_v50 }
  0x49   :  { %327 = vmatmul.mubr.f32.vlgmr.msra.gmra.mrb[0].mxu0 %v41_v35 }
 0x11c   :  { %v131_v52 = vpop.f32.mrb[0].mxu0 }
 0x11d   :  { %v132_v53 = vadd.f32 %v257_v51, %v131_v52  ;;  %v328_v54 = vpop.f32.mrb[1].mxu0 }
 0x11f   :  { %v136_v55 = vmul.f32 0.70710677, %v132_v53  ;;  %v135_v57 = vmul.f32 0.5, %v132_v53 }
 0x121   :  { %420 = verf.f32 %v136_v55 }
 0x12b   :  { %v421_v56 = vpop.eup %420 }
 0x12c   :  { %v138_v58 = vadd.f32 1.0, %v421_v56 }
 0x12e   :  { %v139_v59 = vmul.f32 %v138_v58, %v135_v57 }
 0x130   :  { %362 = vmatmul.mubr.f32.vlgmr.msra.gmra.mrb[0].mxu1 %v139_v59 }
 0x203   :  { %v231_v61 = vpop.f32.mrb[0].mxu1 }
 0x204   :  { %v232_v62 = vadd.f32 %v259_v60, %v231_v61  ;;  %v363_v63 = vpop.f32.mrb[1].mxu1 }
 0x206   :  { %v236_v0 = vmul.f32 0.70710677, %v232_v62  ;;  %v235_v2 = vmul.f32 0.5, %v232_v62 }
 0x208   :  { %422 = verf.f32 %v236_v0 }
 0x212   :  { %v423_v1 = vpop.eup %422 }
 0x213   :  { %v238_v3 = vadd.f32 1.0, %v423_v1 }
 0x215   :  { %v239_v4 = vmul.f32 %v238_v3, %v235_v2 }
 0x217   :  { %240 = vst [vmem:[#allocation7] sm:$0xff] %v239_v4 }
 0x218   :  { %479 = shalt.err (!%p476_p6)
}
 0x219   :  { %s480_s17 = scalar_lea.hbm %s592_s3, 128 }
 0x21a   :  { %p481_p7 = scmp.ne.s32.totalorder %s592_s3, %s480_s17  ;;  %p484_p8 = scmp.lt.u32.totalorder %s480_s17, %s592_s3 }
 0x21c   :  { %p486_p9 = pnand %p484_p8, %p481_p7 }
 0x21e   :  { %489 = shalt.err (!%p486_p9)
}
 0x21f   :  { %250 = dma.vmem_to_hbm [thread:$0]  %s248_s14, 128, %s592_s3, [#allocation4]  }
 0x220   :  { %494 = dma.done.wait [#allocation4], 128  }
 0x221   :  { %495 = vsyncadd [#allocation4], 4294967168 }
 0x222   :  { %254 = vsyncpa [#allocation3], 1 }
 0x223   :  { %255 = vsyncpa [#allocation6], 1 }
 0x224   :  { %256 = vsyncpa [#allocation4], 1 }

</bundles_post_ra>
